<compile_context>
chip_gen: v6e
topology: v6e:2x2x1
jax: 0.10.0
libtpu: 0.0.40
codegen_flags: <defaults>
</compile_context>

<pallas_src>
import jax
import jax.numpy as jnp
from jax import lax
from jax.experimental import pallas as pl
from jax.experimental.pallas import tpu as pltpu

HIDDEN = 64          # hidden_dim (PyTorch default; any value <= 128 works)
N_COMPONENTS = 1     # n_components
BETA_MIN = 0.1
BETA_MAX = 2.0
OUT_DIM = 1 + 3 * N_COMPONENTS   # 4
OUT_PAD = 8                      # padded output width (<= one sublane tile)

# Packed parameter-slab layout: each parameter lives in its own 8-row-aligned
# band of a (PARAM_ROWS, HP) f32 slab; unused rows/lanes are zero, so the
# 128-lane-padded math is exact (ELU(0)=0 keeps padded activations at zero).
HP = 128                     # padded hidden / lane width
R_W1 = 0                     # rows 0:2   -> Linear(2, H) weight
R_B1 = 8                     # row  8     -> its bias
R_W2 = 16                    # rows 16:144
R_B2 = R_W2 + HP             # row  144
R_W3 = R_B2 + 8              # rows 152:280
R_B3 = R_W3 + HP             # row  280
R_WO = R_B3 + 8              # rows 288:416
R_BO = R_WO + HP             # row  416
PARAM_ROWS = R_BO + 8        # 424 rows total


def _elu(v):
    # torch.nn.ELU(alpha=1.0). exp(min(v,0))-1 keeps the unselected branch
    # finite; expm1 lowering support in Mosaic is uncertain, so stay with exp.
    return jnp.where(v > 0, v, jnp.exp(jnp.minimum(v, 0.0)) - 1.0)


def circlepf_kernel(x_ref, p_ref, out_ref):
    x = x_ref[...]                                   # (TB, 2) f32

    # Layer 1: K=2 contraction -> two VPU broadcast-FMAs (skip the MXU).
    w1_r0 = p_ref[R_W1:R_W1 + 1, :]                  # (1, HP)
    w1_r1 = p_ref[R_W1 + 1:R_W1 + 2, :]              # (1, HP)
    b1 = p_ref[R_B1:R_B1 + 1, :]                     # (1, HP)
    h = _elu(x[:, 0:1] * w1_r0 + x[:, 1:2] * w1_r1 + b1)          # (TB, HP) f32

    # Hidden layers 2 & 3 + output head on the MXU: bf16 operands (MXU-native
    # on v5e/v6e/v7x), f32 accumulation, f32 biases. Zero-padded lanes stay 0.
    w2 = p_ref[R_W2:R_W2 + HP, :].astype(jnp.bfloat16)
    h = _elu(jnp.dot(h.astype(jnp.bfloat16), w2,
                     preferred_element_type=jnp.float32)
             + p_ref[R_B2:R_B2 + 1, :])                           # (TB, HP)
    w3 = p_ref[R_W3:R_W3 + HP, :].astype(jnp.bfloat16)
    h = _elu(jnp.dot(h.astype(jnp.bfloat16), w3,
                     preferred_element_type=jnp.float32)
             + p_ref[R_B3:R_B3 + 1, :])                           # (TB, HP)
    wo = p_ref[R_WO:R_WO + HP, :].astype(jnp.bfloat16)
    out = (jnp.dot(h.astype(jnp.bfloat16), wo,
                   preferred_element_type=jnp.float32)
           + p_ref[R_BO:R_BO + 1, :])                             # (TB, HP) f32

    # Head epilogue on a narrow 8-lane slice (only OUT_DIM lanes meaningful):
    # saves ~16x of the sigmoid EUP work and feeds the compact (TB, 8) store.
    nc = N_COMPONENTS
    out8 = out[:, :OUT_PAD]                                       # (TB, 8)
    sig = jax.nn.sigmoid(out8)
    scaled = BETA_MAX * sig + BETA_MIN
    col = lax.broadcasted_iota(jnp.int32, out8.shape, 1)
    head = jnp.where(col == 0, sig,                       # exit_proba
           jnp.where(col < 1 + nc, out8,                  # mixture logits
           jnp.where(col < 1 + 3 * nc, scaled, 0.0)))     # alpha, beta
    out_ref[...] = head


def make_params(key, hidden=HIDDEN, out_dim=OUT_DIM):
    ks = jax.random.split(key, 8)
    scale = 0.1
    w1 = scale * jax.random.normal(ks[0], (2, hidden), jnp.float32)
    b1 = scale * jax.random.normal(ks[1], (1, hidden), jnp.float32)
    w2 = scale * jax.random.normal(ks[2], (hidden, hidden), jnp.float32)
    b2 = scale * jax.random.normal(ks[3], (1, hidden), jnp.float32)
    w3 = scale * jax.random.normal(ks[4], (hidden, hidden), jnp.float32)
    b3 = scale * jax.random.normal(ks[5], (1, hidden), jnp.float32)
    wo = scale * jax.random.normal(ks[6], (hidden, out_dim), jnp.float32)
    bo = scale * jax.random.normal(ks[7], (1, out_dim), jnp.float32)
    return (w1, b1, w2, b2, w3, b3, wo, bo)


def pack_params(params):
    """Pack the 8 weight/bias arrays into one lane-dense (424, 128) f32 slab."""
    w1, b1, w2, b2, w3, b3, wo, bo = params
    h = w2.shape[0]
    od = wo.shape[1]
    slab = jnp.zeros((PARAM_ROWS, HP), jnp.float32)
    slab = slab.at[R_W1:R_W1 + 2, :h].set(w1)
    slab = slab.at[R_B1, :h].set(b1.reshape(-1))
    slab = slab.at[R_W2:R_W2 + h, :h].set(w2)
    slab = slab.at[R_B2, :h].set(b2.reshape(-1))
    slab = slab.at[R_W3:R_W3 + h, :h].set(w3)
    slab = slab.at[R_B3, :h].set(b3.reshape(-1))
    slab = slab.at[R_WO:R_WO + h, :od].set(wo)
    slab = slab.at[R_BO, :od].set(bo.reshape(-1))
    return slab


def _round_up(n, m):
    return ((n + m - 1) // m) * m


def circle_pf_forward(x, params, tile_b=4096):
    """x: (B, 2) f32. Returns (exit_proba (B,), logits (B,nc), alpha (B,nc), beta (B,nc))."""
    B = x.shape[0]
    nc = N_COMPONENTS
    slab = pack_params(params)   # in production: pack once, reuse across calls

    # Batch tile: multiple of 8.  At tb=4096 the pipelined I/O is < 1 MB and
    # in-kernel intermediates ~10 MB — comfortably under the 32 MiB default
    # scoped VMEM on v5e/v6e/v7x, while amortizing the ~0.35 us/step overhead.
    b_pad8 = _round_up(B, 8)
    if b_pad8 > tile_b:
        tb = tile_b
    else:
        # Ensure >= 2 grid steps when possible so the "parallel" batch axis
        # actually shards across v7x's two TensorCores (neutral on v5e/v6e).
        tb = max(8, _round_up(pl.cdiv(b_pad8, 2), 8))
    b_pad = _round_up(B, tb)
    if b_pad != B:
        x = jnp.pad(x, ((0, b_pad - B), (0, 0)))

    out = pl.pallas_call(
        circlepf_kernel,
        out_shape=jax.ShapeDtypeStruct((b_pad, OUT_PAD), jnp.float32),
        grid_spec=pltpu.PrefetchScalarGridSpec(
            num_scalar_prefetch=0,
            grid=(b_pad // tb,),
            in_specs=[
                pl.BlockSpec((tb, 2), lambda i: (i, 0)),              # x tile
                pl.BlockSpec((PARAM_ROWS, HP), lambda i: (0, 0)),     # resident
            ],
            # Last block dim (8) equals the full array dim -> legal; masked
            # vst accepted in exchange for 16x less output DMA than 128 lanes.
            out_specs=pl.BlockSpec((tb, OUT_PAD), lambda i: (i, 0)),
        ),
        compiler_params=pltpu.CompilerParams(
            dimension_semantics=("parallel",)),
    )(x, slab)

    exit_p = out[:B, 0]
    logits = out[:B, 1:1 + nc]
    alpha = out[:B, 1 + nc:1 + 2 * nc]
    beta = out[:B, 1 + 2 * nc:1 + 3 * nc]
    return exit_p, logits, alpha, beta


def circle_pf_forward_ref(x, params):
    """Pure-JAX (f32) reference of the PyTorch forward."""
    w1, b1, w2, b2, w3, b3, wo, bo = params
    h = _elu(x @ w1 + b1)
    h = _elu(h @ w2 + b2)
    h = _elu(h @ w3 + b3)
    out = h @ wo + bo
    nc = N_COMPONENTS
    exit_p = jax.nn.sigmoid(out[..., 0])
    logits = out[..., 1:1 + nc]
    alpha = BETA_MAX * jax.nn.sigmoid(out[..., 1 + nc:1 + 2 * nc]) + BETA_MIN
    beta = BETA_MAX * jax.nn.sigmoid(out[..., 1 + 2 * nc:1 + 3 * nc]) + BETA_MIN
    return exit_p, logits, alpha, beta


if __name__ == "__main__":
    key = jax.random.PRNGKey(0)
    k_x, k_p = jax.random.split(key)
    B = 10   # non-multiple of 8: exercises padding AND the 2-grid-step split
    x = jax.random.normal(k_x, (B, 2), jnp.float32)
    params = make_params(k_p)

    outs = circle_pf_forward(x, params)
    outs = jax.block_until_ready(outs)

    refs = circle_pf_forward_ref(x, params)
    # Tolerance relaxed vs. the f32 reference because the MXU matmuls now use
    # bf16 operands (f32 accumulation); observed error is O(1e-3) here.
    for o, r in zip(outs, refs):
        assert o.shape == r.shape, (o.shape, r.shape)
        assert jnp.allclose(o, r, rtol=2e-2, atol=2e-2), \
            float(jnp.max(jnp.abs(o - r)))

    print("KERNEL_OK")
</pallas_src>

<mosaic_0001>
module attributes {stable_mosaic.version = 11 : i64} {
  func.func @circlepf_kernel(%arg0: i32, %arg1: memref<8x2xf32, #tpu.memory_space<vmem>>, %arg2: memref<424x128xf32, #tpu.memory_space<vmem>>, %arg3: memref<8x8xf32, #tpu.memory_space<vmem>>) attributes {dimension_semantics = [#tpu.dimension_semantics<parallel>], iteration_bounds = array<i64: 2>, scalar_prefetch = 0 : i64, scratch_operands = 0 : i64, tpu.core_type = #tpu.core_type<tc>, window_params = [{transform_indices = @transform_0, window_bounds = array<i64: 8, 2>}, {pipeline_mode = #tpu.pipeline_mode<synchronous>, transform_indices = @transform_1, window_bounds = array<i64: 424, 128>}, {transform_indices = @transform_2, window_bounds = array<i64: 8, 8>}]} {
    %c0 = arith.constant 0 : index
    %c0_0 = arith.constant 0 : index
    %0 = vector.load %arg1[%c0, %c0_0] : memref<8x2xf32, #tpu.memory_space<vmem>>, vector<8x2xf32>
    %c0_1 = arith.constant 0 : index
    %c0_2 = arith.constant 0 : index
    %1 = vector.load %arg2[%c0_1, %c0_2] : memref<424x128xf32, #tpu.memory_space<vmem>>, vector<1x128xf32>
    %c1 = arith.constant 1 : index
    %c0_3 = arith.constant 0 : index
    %2 = vector.load %arg2[%c1, %c0_3] : memref<424x128xf32, #tpu.memory_space<vmem>>, vector<1x128xf32>
    %c8 = arith.constant 8 : index
    %c0_4 = arith.constant 0 : index
    %3 = vector.load %arg2[%c8, %c0_4] : memref<424x128xf32, #tpu.memory_space<vmem>>, vector<1x128xf32>
    %4 = vector.extract_strided_slice %0 {offsets = [0, 0], sizes = [8, 1], strides = [1, 1]} : vector<8x2xf32> to vector<8x1xf32>
    %5 = vector.broadcast %4 : vector<8x1xf32> to vector<8x128xf32>
    %6 = vector.broadcast %1 : vector<1x128xf32> to vector<8x128xf32>
    %7 = arith.mulf %5, %6 : vector<8x128xf32>
    %8 = vector.extract_strided_slice %0 {offsets = [0, 1], sizes = [8, 1], strides = [1, 1]} : vector<8x2xf32> to vector<8x1xf32>
    %9 = vector.broadcast %8 : vector<8x1xf32> to vector<8x128xf32>
    %10 = vector.broadcast %2 : vector<1x128xf32> to vector<8x128xf32>
    %11 = arith.mulf %9, %10 : vector<8x128xf32>
    %12 = arith.addf %7, %11 : vector<8x128xf32>
    %13 = vector.broadcast %3 : vector<1x128xf32> to vector<8x128xf32>
    %14 = arith.addf %12, %13 : vector<8x128xf32>
    %cst = arith.constant 0.000000e+00 : f32
    %15 = vector.broadcast %cst : f32 to vector<8x128xf32>
    %16 = arith.cmpf ogt, %14, %15 : vector<8x128xf32>
    %cst_5 = arith.constant 0.000000e+00 : f32
    %17 = vector.broadcast %cst_5 : f32 to vector<8x128xf32>
    %18 = arith.minimumf %14, %17 : vector<8x128xf32>
    %19 = math.exp %18 : vector<8x128xf32>
    %cst_6 = arith.constant 1.000000e+00 : f32
    %20 = vector.broadcast %cst_6 : f32 to vector<8x128xf32>
    %21 = arith.subf %19, %20 : vector<8x128xf32>
    %22 = arith.select %16, %14, %21 : vector<8x128xi1>, vector<8x128xf32>
    %c16 = arith.constant 16 : index
    %c0_7 = arith.constant 0 : index
    %23 = vector.load %arg2[%c16, %c0_7] : memref<424x128xf32, #tpu.memory_space<vmem>>, vector<128x128xf32>
    %24 = arith.truncf %23 : vector<128x128xf32> to vector<128x128xbf16>
    %25 = arith.truncf %22 : vector<8x128xf32> to vector<8x128xbf16>
    %cst_8 = arith.constant dense<0.000000e+00> : vector<8x128xf32>
    %26 = tpu.matmul %25, %24, %cst_8 {dimension_numbers = #tpu.dot_dimension_numbers<[1], [0], [0], [1], [0, 0, 1, 1], [], []>} : vector<8x128xbf16>, vector<128x128xbf16>, vector<8x128xf32> -> vector<8x128xf32>
    %c144 = arith.constant 144 : index
    %c0_9 = arith.constant 0 : index
    %27 = vector.load %arg2[%c144, %c0_9] : memref<424x128xf32, #tpu.memory_space<vmem>>, vector<1x128xf32>
    %28 = vector.broadcast %27 : vector<1x128xf32> to vector<8x128xf32>
    %29 = arith.addf %26, %28 : vector<8x128xf32>
    %cst_10 = arith.constant 0.000000e+00 : f32
    %30 = vector.broadcast %cst_10 : f32 to vector<8x128xf32>
    %31 = arith.cmpf ogt, %29, %30 : vector<8x128xf32>
    %cst_11 = arith.constant 0.000000e+00 : f32
    %32 = vector.broadcast %cst_11 : f32 to vector<8x128xf32>
    %33 = arith.minimumf %29, %32 : vector<8x128xf32>
    %34 = math.exp %33 : vector<8x128xf32>
    %cst_12 = arith.constant 1.000000e+00 : f32
    %35 = vector.broadcast %cst_12 : f32 to vector<8x128xf32>
    %36 = arith.subf %34, %35 : vector<8x128xf32>
    %37 = arith.select %31, %29, %36 : vector<8x128xi1>, vector<8x128xf32>
    %c152 = arith.constant 152 : index
    %c0_13 = arith.constant 0 : index
    %38 = vector.load %arg2[%c152, %c0_13] : memref<424x128xf32, #tpu.memory_space<vmem>>, vector<128x128xf32>
    %39 = arith.truncf %38 : vector<128x128xf32> to vector<128x128xbf16>
    %40 = arith.truncf %37 : vector<8x128xf32> to vector<8x128xbf16>
    %cst_14 = arith.constant dense<0.000000e+00> : vector<8x128xf32>
    %41 = tpu.matmul %40, %39, %cst_14 {dimension_numbers = #tpu.dot_dimension_numbers<[1], [0], [0], [1], [0, 0, 1, 1], [], []>} : vector<8x128xbf16>, vector<128x128xbf16>, vector<8x128xf32> -> vector<8x128xf32>
    %c280 = arith.constant 280 : index
    %c0_15 = arith.constant 0 : index
    %42 = vector.load %arg2[%c280, %c0_15] : memref<424x128xf32, #tpu.memory_space<vmem>>, vector<1x128xf32>
    %43 = vector.broadcast %42 : vector<1x128xf32> to vector<8x128xf32>
    %44 = arith.addf %41, %43 : vector<8x128xf32>
    %cst_16 = arith.constant 0.000000e+00 : f32
    %45 = vector.broadcast %cst_16 : f32 to vector<8x128xf32>
    %46 = arith.cmpf ogt, %44, %45 : vector<8x128xf32>
    %cst_17 = arith.constant 0.000000e+00 : f32
    %47 = vector.broadcast %cst_17 : f32 to vector<8x128xf32>
    %48 = arith.minimumf %44, %47 : vector<8x128xf32>
    %49 = math.exp %48 : vector<8x128xf32>
    %cst_18 = arith.constant 1.000000e+00 : f32
    %50 = vector.broadcast %cst_18 : f32 to vector<8x128xf32>
    %51 = arith.subf %49, %50 : vector<8x128xf32>
    %52 = arith.select %46, %44, %51 : vector<8x128xi1>, vector<8x128xf32>
    %c288 = arith.constant 288 : index
    %c0_19 = arith.constant 0 : index
    %53 = vector.load %arg2[%c288, %c0_19] : memref<424x128xf32, #tpu.memory_space<vmem>>, vector<128x128xf32>
    %54 = arith.truncf %53 : vector<128x128xf32> to vector<128x128xbf16>
    %55 = arith.truncf %52 : vector<8x128xf32> to vector<8x128xbf16>
    %cst_20 = arith.constant dense<0.000000e+00> : vector<8x128xf32>
    %56 = tpu.matmul %55, %54, %cst_20 {dimension_numbers = #tpu.dot_dimension_numbers<[1], [0], [0], [1], [0, 0, 1, 1], [], []>} : vector<8x128xbf16>, vector<128x128xbf16>, vector<8x128xf32> -> vector<8x128xf32>
    %c416 = arith.constant 416 : index
    %c0_21 = arith.constant 0 : index
    %57 = vector.load %arg2[%c416, %c0_21] : memref<424x128xf32, #tpu.memory_space<vmem>>, vector<1x128xf32>
    %58 = vector.broadcast %57 : vector<1x128xf32> to vector<8x128xf32>
    %59 = arith.addf %56, %58 : vector<8x128xf32>
    %60 = vector.extract_strided_slice %59 {offsets = [0, 0], sizes = [8, 8], strides = [1, 1]} : vector<8x128xf32> to vector<8x8xf32>
    %61 = arith.negf %60 : vector<8x8xf32>
    %62 = math.exp %61 : vector<8x8xf32>
    %cst_22 = arith.constant 1.000000e+00 : f32
    %63 = vector.broadcast %cst_22 : f32 to vector<8x8xf32>
    %64 = arith.addf %63, %62 : vector<8x8xf32>
    %65 = arith.divf %63, %64 : vector<8x8xf32>
    %cst_23 = arith.constant 2.000000e+00 : f32
    %66 = vector.broadcast %cst_23 : f32 to vector<8x8xf32>
    %67 = arith.mulf %66, %65 : vector<8x8xf32>
    %cst_24 = arith.constant 1.000000e-01 : f32
    %68 = vector.broadcast %cst_24 : f32 to vector<8x8xf32>
    %69 = arith.addf %67, %68 : vector<8x8xf32>
    %70 = tpu.iota {dimensions = array<i32: 1>} : vector<8x8xi32>
    %c0_i32 = arith.constant 0 : i32
    %71 = vector.broadcast %c0_i32 : i32 to vector<8x8xi32>
    %72 = arith.cmpi eq, %70, %71 : vector<8x8xi32>
    %c2_i32 = arith.constant 2 : i32
    %73 = vector.broadcast %c2_i32 : i32 to vector<8x8xi32>
    %74 = arith.cmpi slt, %70, %73 : vector<8x8xi32>
    %c4_i32 = arith.constant 4 : i32
    %75 = vector.broadcast %c4_i32 : i32 to vector<8x8xi32>
    %76 = arith.cmpi slt, %70, %75 : vector<8x8xi32>
    %cst_25 = arith.constant 0.000000e+00 : f32
    %77 = vector.broadcast %cst_25 : f32 to vector<8x8xf32>
    %78 = arith.select %76, %69, %77 : vector<8x8xi1>, vector<8x8xf32>
    %79 = arith.select %74, %60, %78 : vector<8x8xi1>, vector<8x8xf32>
    %80 = arith.select %72, %65, %79 : vector<8x8xi1>, vector<8x8xf32>
    %c0_26 = arith.constant 0 : index
    %c0_27 = arith.constant 0 : index
    %81 = vector.load %arg3[%c0_26, %c0_27] : memref<8x8xf32, #tpu.memory_space<vmem>>, vector<8x8xf32>
    tpu.vector_store %arg3[%c0_26, %c0_27], %80 {strides = array<i32>} : memref<8x8xf32, #tpu.memory_space<vmem>>, vector<8x8xf32>,
    return
  }
  func.func @transform_0(%arg0: i32) -> (i32, i32) {
    %c0_i32 = arith.constant 0 : i32
    %c0_i32_0 = arith.constant 0 : i32
    return %arg0, %c0_i32 : i32, i32
  }
  func.func @transform_1(%arg0: i32) -> (i32, i32) {
    %c0_i32 = arith.constant 0 : i32
    %c0_i32_0 = arith.constant 0 : i32
    %c0_i32_1 = arith.constant 0 : i32
    return %c0_i32, %c0_i32_0 : i32, i32
  }
  func.func @transform_2(%arg0: i32) -> (i32, i32) {
    %c0_i32 = arith.constant 0 : i32
    %c0_i32_0 = arith.constant 0 : i32
    return %arg0, %c0_i32 : i32, i32
  }
}

</mosaic_0001>

<bundles_post_ra>
// kernel: tpu_custom_call.1
= control target key start
LH: loop header
LB: loop body
LE: loop exit
PB: predicated region body
PF: predicated region fallthrough
CT: control target
= control target key end

     0   :  { %7 = vsyncpa [#allocation3], 0  ;;  %s700_s9 = smov 0   ;;  %s768_s0 = inlined_call_operand.vmem [shape: f32[16,2], index: 0, kind: input, shape index: {}]   ;;  %s769_s1 = inlined_call_operand.hbm [shape: f32[424,128], index: 1, kind: input, shape index: {}]   ;;  %s770_s2 = inlined_call_operand.vmem [shape: f32[16,8], index: 2, kind: output, shape index: {}]  }
   0x1 LB: > { %s495_s10 = sadd.s32 4294967295, %s676_s9   ;;  %p497_p0 = scmp.ge.s32.totalorder %s676_s9, 1  ;;  %s676_s9 = sphi %s700_s9, %s13_s9  }
   0x2   : > { %p91_p1 = scmp.lt.s32.totalorder %s676_s9, 3  ;;  %s678_s11 = smov [#allocation2]  }
   0x3   : > { %s103_s12 = sshll.u32 %s678_s11, 4  ;;  %p611_p3 = scmp.eq.s32.totalorder %s495_s10, 0  ;;  %s104_s12 = int_to_ptr.vmem [resolvable:$true] %s103_s12 }
   0x4   : > { %p708_p2 = pnand %p497_p0, %p91_p1  ;;  %s651_s14 = scalar_lea.vmem %s104_s12, 6784 }
   0x5   : > { %p652_p7 = scmp.ne.s32.totalorder %s104_s12, %s651_s14  ;;  %p659_p10 = scmp.lt.s32.totalorder %s104_s12, %s104_s12 }
   0x6   : > { %p607_p4 = pneg %p708_p2  ;;  %p660_p11 = scmp.lt.s32.totalorder %s651_s14, %s651_s14 }
   0x8   : > { %p608_p5 = pnand %p611_p3, %p607_p4  ;;  %p661_p12 = por %p660_p11, %p659_p10 }
   0xa   : > { %p642_p6 = pneg %p608_p5 }
   0xc   : > { %p654_p8 = pnand %p652_p7, %p642_p6 }
   0xe   : > { %p655_p9 = pneg %p654_p8 }
  0x10   : > { %p662_p13 = pnand %p661_p12, %p655_p9 }
  0x12   : > { %665 = shalt.err (!%p662_p13)
}
  0x13   : > { %s679_s15 = smov 128   ;;  %s680_s16 = smov 8  }
  0x14   : > { %610 = dma.hbm_to_vmem [thread:$0]  (!%p608_p5), %s769_s1, 6784, %s104_s12, [#allocation3], %s679_s15, %s679_s15, %s680_s16  }
  0x15   : > { %126 = sbr.rel (%p708_p2) target bundleno = 862 (0x35e), region = 28 }
  0x1a   : > { %671 = dma.done.wait (%p611_p3), [#allocation3], 6784  }
  0x1b   : > { %673 = vsyncadd (%p611_p3), [#allocation3], 4294960512  ;;  %p146_p0 = scmp.lt.s32.totalorder %s495_s10, 1  ;;  %v681_v0 = vmov 0   ;;  %v682_v1 = vmov 0.0   ;;  %v204_v3 = vld [vmem:[#allocation2 + $0x80] sm:$0xff] }
  0x1c   : > { %628 = vset.pattern.permute.xlu0 %v681_v0  ;;  %543 = vmatprep.subr.bf16.mxu0 %v682_v1  ;;  %v205_v4 = vld [vmem:[#allocation2 + $0x88] sm:$0xff]  ;;  %v202_v6 = vld [vmem:[#allocation2 + $0x70] sm:$0xff]  ;;  %v203_v7 = vld [vmem:[#allocation2 + $0x78] sm:$0xff]  ;;  %v683_v9 = vmov 1   ;;  %vm684_vm0 = vmmov 0   ;;  %vm428_vm7 = vcmask 64512  }
  0x1d   : > { %s773_s10 = smov (!%p146_p0, %s495_s10), 1  ;;  %563 = vmatprep.subr.bf16.mxu1 %v682_v1  ;;  %v213_v5 = vpack.c.bf16 %v205_v4, %v204_v3  ;;  %v212_v8 = vpack.c.bf16 %v203_v7, %v202_v6  ;;  %v200_v10 = vld [vmem:[#allocation2 + $0x60] sm:$0xff]  ;;  %v201_v11 = vld [vmem:[#allocation2 + $0x68] sm:$0xff]  ;;  %v198_v13 = vld [vmem:[#allocation2 + $0x50] sm:$0xff]  ;;  %559 = vmatprep.mubr.msk.bf16.mxu0 %vm684_vm0, %v682_v1 }
  0x1e   : > { %s502_s19 = sshll.u32 %s773_s10, 3  ;;  %v211_v12 = vpack.c.bf16 %v201_v11, %v200_v10  ;;  %v199_v14 = vld [vmem:[#allocation2 + $0x58] sm:$0xff]  ;;  %v196_v16 = vld [vmem:[#allocation2 + $0x40] sm:$0xff]  ;;  %v197_v17 = vld [vmem:[#allocation2 + $0x48] sm:$0xff]  ;;  %579 = vmatprep.mubr.msk.bf16.mxu1 %vm684_vm0, %v682_v1 }
  0x1f   : > { %s149_s22 = scalar_lea.vmem %s768_s0, %s502_s19  ;;  %544 = vmatpush3.bf16.msra.mxu0 %v213_v5  ;;  %v210_v15 = vpack.c.bf16 %v199_v14, %v198_v13  ;;  %v209_v18 = vpack.c.bf16 %v197_v17, %v196_v16  ;;  %v194_v19 = vld [vmem:[#allocation2 + $0x30] sm:$0xff]  ;;  %v195_v20 = vld [vmem:[#allocation2 + $0x38] sm:$0xff]  ;;  %v192_v22 = vld [vmem:[#allocation2 + $0x20] sm:$0xff]  ;;  %s153_s25 = scalar_lea.vmem %s770_s2, %s502_s19 }
  0x20   : > { %v155_v2 = vld [vmem:[%s149_s22] sm:$0xff]  ;;  %545 = vmatprep.subr.bf16.mxu0 %v682_v1  ;;  %v208_v21 = vpack.c.bf16 %v195_v20, %v194_v19  ;;  %v193_v23 = vld [vmem:[#allocation2 + $0x28] sm:$0xff]  ;;  %v190_v25 = vld [vmem:[#allocation2 + $0x10] sm:$0xff] }
  0x21   : > { %161 = vperm.xlu0 %628, %v155_v2   ;;  %v207_v24 = vpack.c.bf16 %v193_v23, %v192_v22  ;;  %v191_v26 = vld [vmem:[#allocation2 + $0x18] sm:$0xff]  ;;  %v280_v28 = vld [vmem:[#allocation2 + $0x108] sm:$0xff]  ;;  %v281_v29 = vld [vmem:[#allocation2 + $0x110] sm:$0xff] }
  0x22   : > { %v206_v27 = vpack.c.bf16 %v191_v26, %v190_v25  ;;  %v278_v30 = vld [vmem:[#allocation2 + $0xf8] sm:$0xff]  ;;  %v289_v31 = vpack.c.bf16 %v281_v29, %v280_v28  ;;  %v279_v32 = vld [vmem:[#allocation2 + $0x100] sm:$0xff]  ;;  %v506_v40 = vld [vmem:[#allocation2 + $0x8] ss:$0 sm:$0xff] }
  0x23   : > { %546 = vmatpush3.bf16.msra.mxu0 %v212_v8  ;;  %v288_v33 = vpack.c.bf16 %v279_v32, %v278_v30  ;;  %v504_v35 = vld [vmem:[#allocation2] ss:$0 sm:$0xff]  ;;  %v505_v36 = vld [vmem:[#allocation2 + $0x1] ss:$0 sm:$0xff]  ;;  %v276_v49 = vld [vmem:[#allocation2 + $0xe8] sm:$0xff] }
  0x24   : > { %547 = vmatprep.subr.bf16.mxu0 %v682_v1  ;;  %564 = vmatpush3.bf16.msra.mxu1 %v289_v31  ;;  %v277_v50 = vld [vmem:[#allocation2 + $0xf0] sm:$0xff]  ;;  %v274_v52 = vld [vmem:[#allocation2 + $0xd8] sm:$0xff]  ;;  %v275_v53 = vld [vmem:[#allocation2 + $0xe0] sm:$0xff] }
  0x25   : > { %629 = vset.pattern.permute.xlu0 %v683_v9  ;;  %565 = vmatprep.subr.bf16.mxu1 %v682_v1  ;;  %v287_v51 = vpack.c.bf16 %v277_v50, %v276_v49  ;;  %v286_v54 = vpack.c.bf16 %v275_v53, %v274_v52  ;;  %v272_v55 = vld [vmem:[#allocation2 + $0xc8] sm:$0xff]  ;;  %v273_v56 = vld [vmem:[#allocation2 + $0xd0] sm:$0xff]  ;;  %v270_v58 = vld [vmem:[#allocation2 + $0xb8] sm:$0xff] }
  0x26   : > { %170 = vperm.xlu0 %629, %v155_v2   ;;  %v285_v57 = vpack.c.bf16 %v273_v56, %v272_v55  ;;  %v271_v59 = vld [vmem:[#allocation2 + $0xc0] sm:$0xff]  ;;  %v268_v61 = vld [vmem:[#allocation2 + $0xa8] sm:$0xff]  ;;  %v269_v62 = vld [vmem:[#allocation2 + $0xb0] sm:$0xff] }
  0x27   : > { %548 = vmatpush3.bf16.msra.mxu0 %v211_v12  ;;  %v284_v60 = vpack.c.bf16 %v271_v59, %v270_v58  ;;  %v283_v63 = vpack.c.bf16 %v269_v62, %v268_v61  ;;  %v266_v0 = vld [vmem:[#allocation2 + $0x98] sm:$0xff]  ;;  %v267_v2 = vld [vmem:[#allocation2 + $0xa0] sm:$0xff]  ;;  %v356_v4 = vld [vmem:[#allocation2 + $0x190] sm:$0xff] }
  0x28   : > { %549 = vmatprep.subr.bf16.mxu0 %v682_v1  ;;  %566 = vmatpush3.bf16.msra.mxu1 %v288_v33  ;;  %v282_v3 = vpack.c.bf16 %v267_v2, %v266_v0  ;;  %v357_v5 = vld [vmem:[#allocation2 + $0x198] sm:$0xff]  ;;  %v354_v6 = vld [vmem:[#allocation2 + $0x180] sm:$0xff]  ;;  %v355_v8 = vld [vmem:[#allocation2 + $0x188] sm:$0xff] }
  0x29   : > { %567 = vmatprep.subr.bf16.mxu1 %v682_v1  ;;  %v365_v7 = vpack.c.bf16 %v357_v5, %v356_v4  ;;  %v364_v9 = vpack.c.bf16 %v355_v8, %v354_v6  ;;  %v508_v10 = vld [vmem:[#allocation2 + $0x90] ss:$0 sm:$0xff]  ;;  %v353_v23 = vld [vmem:[#allocation2 + $0x178] sm:$0xff]  ;;  %v350_v25 = vld [vmem:[#allocation2 + $0x160] sm:$0xff] }
  0x2a   : > { %v352_v22 = vld [vmem:[#allocation2 + $0x170] sm:$0xff]  ;;  %v351_v26 = vld [vmem:[#allocation2 + $0x168] sm:$0xff]  ;;  %v349_v29 = vld [vmem:[#allocation2 + $0x158] sm:$0xff] }
  0x2b   : > { %550 = vmatpush3.bf16.msra.mxu0 %v210_v15  ;;  %v348_v28 = vld [vmem:[#allocation2 + $0x150] sm:$0xff]  ;;  %v346_v31 = vld [vmem:[#allocation2 + $0x140] sm:$0xff]  ;;  %v347_v32 = vld [vmem:[#allocation2 + $0x148] sm:$0xff] }
  0x2c   : > { %551 = vmatprep.subr.bf16.mxu0 %v682_v1  ;;  %568 = vmatpush3.bf16.msra.mxu1 %v287_v51  ;;  %v361_v30 = vpack.c.bf16 %v349_v29, %v348_v28  ;;  %v360_v33 = vpack.c.bf16 %v347_v32, %v346_v31 }
  0x2d   : > { %569 = vmatprep.subr.bf16.mxu1 %v682_v1 }
  0x2f   : > { %552 = vmatpush3.bf16.msra.mxu0 %v209_v18 }
  0x30   : > { %553 = vmatprep.subr.bf16.mxu0 %v682_v1  ;;  %570 = vmatpush3.bf16.msra.mxu1 %v286_v54 }
  0x31   : > { %571 = vmatprep.subr.bf16.mxu1 %v682_v1 }
  0x33   : > { %554 = vmatpush3.bf16.msra.mxu0 %v208_v21 }
  0x34   : > { %555 = vmatprep.subr.bf16.mxu0 %v682_v1  ;;  %572 = vmatpush3.bf16.msra.mxu1 %v285_v57 }
  0x35   : > { %573 = vmatprep.subr.bf16.mxu1 %v682_v1 }
  0x37   : > { %556 = vmatpush3.bf16.msra.mxu0 %v207_v24  ;;  %v363_v24 = vpack.c.bf16 %v353_v23, %v352_v22 }
  0x38   : > { %557 = vmatprep.subr.bf16.mxu0 %v682_v1  ;;  %574 = vmatpush3.bf16.msra.mxu1 %v284_v60  ;;  %v420_v60 = vlaneseq }
  0x39   : > { %575 = vmatprep.subr.bf16.mxu1 %v682_v1 }
  0x3a   : > { %v421_v61 = vand.u32 127, %v420_v60 }
  0x3b   : > { %558 = vmatpush3.bf16.msra.mxu0 %v206_v27  ;;  %v362_v27 = vpack.c.bf16 %v351_v26, %v350_v25 }
  0x3c   : > { %583 = vmatprep.subr.bf16.mxu0 %v682_v1  ;;  %576 = vmatpush3.bf16.msra.mxu1 %v283_v63  ;;  %vm424_vm4 = vcmp.lt.s32.totalorder %v421_v61, 4  ;;  %vm423_vm5 = vcmp.lt.s32.totalorder %v421_v61, 2  ;;  %vm422_vm6 = vcmp.eq.s32.totalorder %v421_v61, 0 }
  0x3d   : > { %577 = vmatprep.subr.bf16.mxu1 %v682_v1 }
  0x40   : > { %578 = vmatpush3.bf16.msra.mxu1 %v282_v3 }
  0x9c   : > { %v162_v34 = vpop.permute.xlu0 %161 }
  0x9d   : > { %v168_v38 = vmul.f32 %v504_v35, %v162_v34  ;;  %v344_v34 = vld [vmem:[#allocation2 + $0x130] sm:$0xff]  ;;  %v345_v35 = vld [vmem:[#allocation2 + $0x138] sm:$0xff] }
  0xa1   : > { %v171_v37 = vpop.permute.xlu0 %170 }
  0xa2   : > { %v177_v39 = vmul.f32 %v505_v36, %v171_v37  ;;  %v359_v36 = vpack.c.bf16 %v345_v35, %v344_v34  ;;  %v342_v37 = vld [vmem:[#allocation2 + $0x120] sm:$0xff] }
  0xa4   : > { %v178_v41 = vadd.f32 %v177_v39, %v168_v38  ;;  %v343_v38 = vld [vmem:[#allocation2 + $0x128] sm:$0xff] }
  0xa5   : > { %v358_v39 = vpack.c.bf16 %v343_v38, %v342_v37 }
  0xa6   : > { %v183_v42 = vadd.f32 %v506_v40, %v178_v41  ;;  %v510_v40 = vld [vmem:[#allocation2 + $0x118] ss:$0 sm:$0xff] }
  0xa8   : > { %v185_v43 = vmin.f32 %v183_v42, 0.0  ;;  %vm184_vm1 = vcmp.gt.f32.partialorder %v183_v42, 0.0 }
  0xaa   : > { %v186_v44 = vmul.f32 1.442695, %v185_v43 }
  0xac   : > { %630 = vpow2.f32 %v186_v44 }
  0xb9   : > { %v631_v45 = vpop.eup %630 }
  0xba   : > { %v507_v46 = vadd.f32 -1.0, %v631_v45 }
  0xbc   : > { %v189_v47 = vsel %vm184_vm1, %v183_v42, %v507_v46 }
  0xbd   : > { %v214_v48 = vpack.c.bf16 %v189_v47, %v189_v47 }
  0xbf   : > { %560 = vmatmul.mubr.bf16.vlgmr.msra.gmra.mxu0 %v214_v48 }
  0xc0   : > { %599 = vmatprep.mubr.msk.bf16.mxu0 %vm684_vm0, %v682_v1  ;;  %584 = vmatpush3.bf16.msra.mxu0 %v365_v7 }
  0xc1   : > { %585 = vmatprep.subr.bf16.mxu0 %v682_v1 }
  0xc4   : > { %586 = vmatpush3.bf16.msra.mxu0 %v364_v9 }
  0xc5   : > { %587 = vmatprep.subr.bf16.mxu0 %v682_v1 }
  0xc8   : > { %588 = vmatpush3.bf16.msra.mxu0 %v363_v24 }
  0xc9   : > { %589 = vmatprep.subr.bf16.mxu0 %v682_v1 }
  0xcc   : > { %590 = vmatpush3.bf16.msra.mxu0 %v362_v27 }
  0xcd   : > { %591 = vmatprep.subr.bf16.mxu0 %v682_v1 }
  0xd0   : > { %592 = vmatpush3.bf16.msra.mxu0 %v361_v30 }
  0xd1   : > { %593 = vmatprep.subr.bf16.mxu0 %v682_v1 }
  0xd4   : > { %594 = vmatpush3.bf16.msra.mxu0 %v360_v33 }
  0xd5   : > { %595 = vmatprep.subr.bf16.mxu0 %v682_v1 }
  0xd8   : > { %596 = vmatpush3.bf16.msra.mxu0 %v359_v36 }
  0xd9   : > { %597 = vmatprep.subr.bf16.mxu0 %v682_v1  ;;  %v512_v1 = vld [vmem:[#allocation2 + $0x1a0] ss:$0 sm:$0xff] }
  0xdc   : > { %598 = vmatpush3.bf16.msra.mxu0 %v358_v39 }
 0x17f   : > { %v254_v11 = vpop.f32.mrf.mxu0 }
 0x180   : > { %v255_v12 = vadd.f32 %v508_v10, %v254_v11 }
 0x181   : > { %v561_v13 = vpop.f32.mrf.mxu0 }
 0x182   : > { %v261_v14 = vmin.f32 %v255_v12, 0.0  ;;  %vm260_vm2 = vcmp.gt.f32.partialorder %v255_v12, 0.0 }
 0x183   : > { %v257_v15 = vpop.f32.mrf.mxu0 }
 0x184   : > { %v262_v16 = vmul.f32 1.442695, %v261_v14 }
 0x185   : > { %v562_v17 = vpop.f32.mrf.mxu0 }
 0x186   : > { %632 = vpow2.f32 %v262_v16 }
 0x193   : > { %v633_v18 = vpop.eup %632 }
 0x194   : > { %v509_v19 = vadd.f32 -1.0, %v633_v18 }
 0x196   : > { %v265_v20 = vsel %vm260_vm2, %v255_v12, %v509_v19 }
 0x197   : > { %v290_v21 = vpack.c.bf16 %v265_v20, %v265_v20 }
 0x199   : > { %580 = vmatmul.mubr.bf16.vlgmr.msra.gmra.mxu1 %v290_v21 }
 0x259   : > { %v330_v41 = vpop.f32.mrf.mxu1 }
 0x25a   : > { %v331_v42 = vadd.f32 %v510_v40, %v330_v41 }
 0x25b   : > { %v581_v43 = vpop.f32.mrf.mxu1 }
 0x25c   : > { %v337_v44 = vmin.f32 %v331_v42, 0.0  ;;  %vm336_vm3 = vcmp.gt.f32.partialorder %v331_v42, 0.0 }
 0x25d   : > { %v333_v45 = vpop.f32.mrf.mxu1 }
 0x25e   : > { %v338_v46 = vmul.f32 1.442695, %v337_v44 }
 0x25f   : > { %v582_v47 = vpop.f32.mrf.mxu1 }
 0x260   : > { %634 = vpow2.f32 %v338_v46 }
 0x26d   : > { %v635_v48 = vpop.eup %634 }
 0x26e   : > { %v511_v49 = vadd.f32 -1.0, %v635_v48 }
 0x270   : > { %v341_v50 = vsel %vm336_vm3, %v331_v42, %v511_v49 }
 0x271   : > { %v366_v51 = vpack.c.bf16 %v341_v50, %v341_v50 }
 0x273   : > { %600 = vmatmul.mubr.bf16.vlgmr.msra.gmra.mxu0 %v366_v51 }
 0x333   : > { %v406_v52 = vpop.f32.mrf.mxu0 }
 0x334   : > { %v407_v53 = vadd.f32 %v512_v1, %v406_v52 }
 0x335   : > { %v601_v54 = vpop.f32.mrf.mxu0 }
 0x336   : > { %v513_v55 = vmul.f32 -1.442695, %v407_v53 }
 0x337   : > { %v409_v56 = vpop.f32.mrf.mxu0 }
 0x338   : > { %636 = vpow2.f32 %v513_v55 }
 0x339   : > { %v602_v57 = vpop.f32.mrf.mxu0 }
 0x345   : > { %v637_v58 = vpop.eup %636 }
 0x346   : > { %v415_v59 = vadd.f32 1.0, %v637_v58 }
 0x348   : > { %638 = vrcp.f32 %v415_v59 }
 0x355   : > { %v639_v62 = vpop.eup %638 }
 0x356   : > { %v418_v63 = vmul.f32 2.0, %v639_v62 }
 0x358   : > { %v419_v0 = vadd.f32 0.1, %v418_v63 }
 0x35a   : > { %v425_v2 = vsel %vm424_vm4, %v419_v0, 0.0 }
 0x35b   : > { %v426_v3 = vsel %vm423_vm5, %v407_v53, %v425_v2 }
 0x35c   : > { %v427_v4 = vsel %vm422_vm6, %v639_v62, %v426_v3 }
 0x35d   : > { %429 = vst.msk [vmem:[%s153_s25] sm:$0xff] %vm428_vm7, %v427_v4 }
 0x35e PF: > { %s13_s9 = sadd.s32 1, %s676_s9  }
 0x35f   : > { %p10_p1 = scmp.ge.s32.totalorder %s13_s9, 4  }
 0x361   :  { %12 = sbr.rel (!%p10_p1) target bundleno = 1 (0x1), region = 63 }
 0x366   :  { %449 = vsyncpa [#allocation3], 1 }
 0x367   :  { %451 = vsyncpa [#allocation3 + $0x1], 1 }

</bundles_post_ra>
